<compile_context>
chip_gen: v7x
topology: tpu7x:2x2x1
jax: 0.10.0
libtpu: 0.0.40
codegen_flags: <defaults>
</compile_context>

<pallas_src>
import jax
import jax.numpy as jnp
from jax.experimental import pallas as pl
from jax.experimental.pallas import tpu as pltpu


def _folded_linear_kernel(x_ref, w_ref, b_ref, o_ref):
    # bf16 MXU operands, f32 accumulation; bias add + store in f32.
    acc = jnp.dot(
        x_ref[...].astype(jnp.bfloat16),  # (TILE_B, 16) bf16
        w_ref[...],                        # (16, 16) bf16 (folded weight)
        preferred_element_type=jnp.float32,
    )
    o_ref[...] = (acc + b_ref[...]).astype(o_ref.dtype)


def fold_te_linear_params(params):
    """Fold the 3 activation-free Linear layers into one matmul.

    Call ONCE at param-prep time (not per forward):
        y = ((x @ W1^T + b1) @ W2^T + b2) @ W3^T + b3
          =  x @ (W1^T W2^T W3^T) + ((b1 W2^T + b2) W3^T + b3)
    """
    w1t, w2t, w3t = params["w1"].T, params["w2"].T, params["w3"].T
    w_fold = (w1t @ w2t @ w3t).astype(jnp.bfloat16)                 # (16, 16)
    b_fold = (params["b1"] @ w2t + params["b2"]) @ w3t + params["b3"]
    return {"w": w_fold, "b": b_fold.reshape(1, -1).astype(jnp.float32)}


def _round_up(n, m):
    return ((n + m - 1) // m) * m


def te_linear_forward(x, folded, *, tile_b=256):
    """x: (B, 16) float32.  folded: output of fold_te_linear_params()."""
    B, d_in = x.shape
    w = folded["w"]                      # (16, 16) bf16
    b = folded["b"]                      # (1, 16) f32
    d_out = w.shape[1]

    # Sublane-aligned batch tile; pad B up to a whole number of tiles.
    tile_b = _round_up(min(tile_b, _round_up(B, 8)), 8)
    b_pad = _round_up(B, tile_b)
    x_p = jnp.pad(x, ((0, b_pad - B), (0, 0))) if b_pad != B else x

    out = pl.pallas_call(
        _folded_linear_kernel,
        out_shape=jax.ShapeDtypeStruct((b_pad, d_out), jnp.float32),
        grid_spec=pltpu.PrefetchScalarGridSpec(
            num_scalar_prefetch=0,
            grid=(b_pad // tile_b,),
            in_specs=[
                pl.BlockSpec((tile_b, d_in), lambda i: (i, 0)),   # x tile
                pl.BlockSpec((d_in, d_out), lambda i: (0, 0)),    # pinned W_fold
                pl.BlockSpec((1, d_out), lambda i: (0, 0)),       # pinned b_fold
            ],
            out_specs=pl.BlockSpec((tile_b, d_out), lambda i: (i, 0)),
        ),
        compiler_params=pltpu.CompilerParams(
            dimension_semantics=("parallel",),   # v7x: split batch tiles over 2 TCs
        ),
    )(x_p, w, b)

    return out[:B] if b_pad != B else out


def _init_params(key):
    """Deterministic synthetic init for the three TE Linear layers.

    Shapes follow te.pytorch.Linear(in, out): weight (out, in), bias (out,).
    """
    dims = [(16, 32), (32, 64), (64, 16)]
    params = {}
    keys = jax.random.split(key, 2 * len(dims))
    for i, (fan_in, fan_out) in enumerate(dims):
        wk, bk = keys[2 * i], keys[2 * i + 1]
        bound = 1.0 / jnp.sqrt(fan_in)
        params[f"w{i + 1}"] = jax.random.uniform(
            wk, (fan_out, fan_in), jnp.float32, minval=-bound, maxval=bound
        )
        params[f"b{i + 1}"] = jax.random.uniform(
            bk, (fan_out,), jnp.float32, minval=-bound, maxval=bound
        )
    return params


def _reference(x, params):
    h = x
    for i in (1, 2, 3):
        h = h @ params[f"w{i}"].T + params[f"b{i}"]
    return h


if __name__ == "__main__":
    key = jax.random.PRNGKey(0)
    pkey, xkey, xkey2 = jax.random.split(key, 3)
    params = _init_params(pkey)

    # Fold once (param-prep time), not per forward call.
    folded = fold_te_linear_params(params)

    # Matches TELinear.get_input(): torch.randn(2, 16)
    x = jax.random.normal(xkey, (2, 16), dtype=jnp.float32)
    out = jax.block_until_ready(te_linear_forward(x, folded))
    ref = _reference(x, params)
    assert out.shape == (2, 16), out.shape
    assert out.dtype == jnp.float32, out.dtype
    # bf16 matmul operands (f32 accumulation) -> loosened tolerance vs f32 ref.
    assert jnp.allclose(out, ref, atol=5e-2, rtol=5e-2), float(jnp.max(jnp.abs(out - ref)))

    # Larger batch to exercise the multi-tile grid / parallel path.
    xb = jax.random.normal(xkey2, (512, 16), dtype=jnp.float32)
    outb = jax.block_until_ready(te_linear_forward(xb, folded, tile_b=256))
    refb = _reference(xb, params)
    assert outb.shape == (512, 16), outb.shape
    assert jnp.allclose(outb, refb, atol=5e-2, rtol=5e-2), float(jnp.max(jnp.abs(outb - refb)))

    print("KERNEL_OK")
</pallas_src>

<mosaic_0001>
module attributes {stable_mosaic.version = 11 : i64} {
  func.func @_folded_linear_kernel(%arg0: i32, %arg1: memref<8x16xf32, #tpu.memory_space<vmem>>, %arg2: memref<16x16xbf16, #tpu.memory_space<vmem>>, %arg3: memref<1x16xf32, #tpu.memory_space<vmem>>, %arg4: memref<8x16xf32, #tpu.memory_space<vmem>>) attributes {dimension_semantics = [#tpu.dimension_semantics<parallel>], iteration_bounds = array<i64: 1>, scalar_prefetch = 0 : i64, scratch_operands = 0 : i64, tpu.core_type = #tpu.core_type<tc>, window_params = [{transform_indices = @transform_0, window_bounds = array<i64: 8, 16>}, {pipeline_mode = #tpu.pipeline_mode<synchronous>, transform_indices = @transform_1, window_bounds = array<i64: 16, 16>}, {pipeline_mode = #tpu.pipeline_mode<synchronous>, transform_indices = @transform_2, window_bounds = array<i64: 1, 16>}, {transform_indices = @transform_3, window_bounds = array<i64: 8, 16>}]} {
    %c0 = arith.constant 0 : index
    %c0_0 = arith.constant 0 : index
    %0 = vector.load %arg1[%c0, %c0_0] : memref<8x16xf32, #tpu.memory_space<vmem>>, vector<8x16xf32>
    %1 = arith.truncf %0 : vector<8x16xf32> to vector<8x16xbf16>
    %c0_1 = arith.constant 0 : index
    %c0_2 = arith.constant 0 : index
    %2 = vector.load %arg2[%c0_1, %c0_2] : memref<16x16xbf16, #tpu.memory_space<vmem>>, vector<16x16xbf16>
    %cst = arith.constant dense<0.000000e+00> : vector<8x16xf32>
    %3 = tpu.matmul %1, %2, %cst {dimension_numbers = #tpu.dot_dimension_numbers<[1], [0], [0], [1], [0, 0, 1, 1], [], []>} : vector<8x16xbf16>, vector<16x16xbf16>, vector<8x16xf32> -> vector<8x16xf32>
    %c0_3 = arith.constant 0 : index
    %c0_4 = arith.constant 0 : index
    %4 = vector.load %arg3[%c0_3, %c0_4] : memref<1x16xf32, #tpu.memory_space<vmem>>, vector<1x16xf32>
    %5 = vector.broadcast %4 : vector<1x16xf32> to vector<8x16xf32>
    %6 = arith.addf %3, %5 : vector<8x16xf32>
    %c0_5 = arith.constant 0 : index
    %c0_6 = arith.constant 0 : index
    %7 = vector.load %arg4[%c0_5, %c0_6] : memref<8x16xf32, #tpu.memory_space<vmem>>, vector<8x16xf32>
    tpu.vector_store %arg4[%c0_5, %c0_6], %6 {strides = array<i32>} : memref<8x16xf32, #tpu.memory_space<vmem>>, vector<8x16xf32>,
    return
  }
  func.func @transform_0(%arg0: i32) -> (i32, i32) {
    %c0_i32 = arith.constant 0 : i32
    %c0_i32_0 = arith.constant 0 : i32
    return %arg0, %c0_i32 : i32, i32
  }
  func.func @transform_1(%arg0: i32) -> (i32, i32) {
    %c0_i32 = arith.constant 0 : i32
    %c0_i32_0 = arith.constant 0 : i32
    %c0_i32_1 = arith.constant 0 : i32
    return %c0_i32, %c0_i32_0 : i32, i32
  }
  func.func @transform_2(%arg0: i32) -> (i32, i32) {
    %c0_i32 = arith.constant 0 : i32
    %c0_i32_0 = arith.constant 0 : i32
    %c0_i32_1 = arith.constant 0 : i32
    return %c0_i32, %c0_i32_0 : i32, i32
  }
  func.func @transform_3(%arg0: i32) -> (i32, i32) {
    %c0_i32 = arith.constant 0 : i32
    %c0_i32_0 = arith.constant 0 : i32
    return %arg0, %c0_i32 : i32, i32
  }
}

</mosaic_0001>

<bundles_post_ra>
// kernel: tpu_custom_call.1
= control target key start
LH: loop header
LB: loop body
LE: loop exit
PB: predicated region body
PF: predicated region fallthrough
CT: control target
= control target key end

     0   :  { %8 = vsyncpa [#allocation3], 0  ;;  %s284_s0 = inlined_call_operand.hbm [shape: f32[8,16], index: 0, kind: input, shape index: {}]   ;;  %s285_s1 = inlined_call_operand.hbm [shape: bf16[16,16], index: 1, kind: input, shape index: {}]   ;;  %s286_s2 = inlined_call_operand.vmem [shape: f32[1,16], index: 2, kind: input, shape index: {}]   ;;  %s287_s3 = inlined_call_operand.hbm [shape: f32[8,16], index: 3, kind: output, shape index: {}]  }
   0x1   :  { %9 = vsyncpa [#allocation6], 0 }
   0x2   :  { %10 = vsyncpa [#allocation4], 0  ;;  %s211_s12 = smov [#allocation2]   ;;  %s212_s14 = smov [#allocation5]  }
   0x3   :  { %s17_s13 = sshll.u32 %s211_s12, 4  ;;  %s26_s15 = sshll.u32 %s212_s14, 4  ;;  %s18_s13 = int_to_ptr.vmem [resolvable:$true] %s17_s13  ;;  %s238_s15 = int_to_ptr.vmem [resolvable:$true] %s26_s15 }
   0x4   :  { %s139_s18 = scalar_lea.hbm %s284_s0, 128 }
   0x5   :  { %p140_p0 = scmp.ne.s32.totalorder %s284_s0, %s139_s18  ;;  %p143_p1 = scmp.lt.u32.totalorder %s139_s18, %s284_s0 }
   0x7   :  { %p145_p2 = pnand %p143_p1, %p140_p0 }
   0x9   :  { %148 = shalt.err (!%p145_p2)
}
   0xa   :  { %s149_s23 = scalar_lea.vmem %s18_s13, 128  ;;  %p154_p4 = scmp.lt.s32.totalorder %s18_s13, %s18_s13 }
   0xb   :  { %p150_p3 = scmp.ne.s32.totalorder %s18_s13, %s149_s23  ;;  %p155_p5 = scmp.lt.s32.totalorder %s149_s23, %s149_s23 }
   0xd   :  { %p156_p6 = por %p155_p5, %p154_p4 }
   0xf   :  { %p157_p7 = pnand %p156_p6, %p150_p3 }
  0x11   :  { %160 = shalt.err (!%p157_p7)
}
  0x12   :  { %20 = dma.hbm_to_vmem [thread:$0]  %s284_s0, 128, %s18_s13, [#allocation3]  }
  0x13   :  { %s161_s28 = scalar_lea.hbm %s285_s1, 128 }
  0x14   :  { %p162_p8 = scmp.ne.s32.totalorder %s285_s1, %s161_s28  ;;  %p165_p9 = scmp.lt.u32.totalorder %s161_s28, %s285_s1 }
  0x16   :  { %p167_p10 = pnand %p165_p9, %p162_p8 }
  0x18   :  { %170 = shalt.err (!%p167_p10)
}
  0x19   :  { %s171_s6 = scalar_lea.vmem %s238_s15, 128  ;;  %p176_p12 = scmp.lt.s32.totalorder %s238_s15, %s238_s15 }
  0x1a   :  { %p172_p11 = scmp.ne.s32.totalorder %s238_s15, %s171_s6  ;;  %p177_p13 = scmp.lt.s32.totalorder %s171_s6, %s171_s6 }
  0x1c   :  { %p178_p0 = por %p177_p13, %p176_p12 }
  0x1e   :  { %p179_p1 = pnand %p178_p0, %p172_p11 }
  0x20   :  { %182 = shalt.err (!%p179_p1)
}
  0x21   :  { %s213_s0 = smov 64   ;;  %s214_s7 = smov 4  }
  0x22   :  { %32 = dma.hbm_to_vmem [thread:$0]  %s285_s1, 128, %s238_s15, [#allocation6], %s213_s0, %s213_s0, %s214_s7  }
  0x23   :  { %205 = dma.done.wait [#allocation3], 128  }
  0x24   :  { %206 = vsyncadd [#allocation3], 4294967168 }
  0x25   :  { %207 = dma.done.wait [#allocation6], 128  }
  0x26   :  { %208 = vsyncadd [#allocation6], 4294967168  ;;  %v215_v0 = vmov 0.0   ;;  %vm216_vm0 = vmmov 0   ;;  %v138_v1 = vld [vmem:[#allocation5] sm:$0xff]   ;;  %v42_v2 = vld [vmem:[#allocation2] sm:$0xff] }
  0x27   :  { %125 = vmatprep.subr.bf16.mxu0 %v215_v0  ;;  %127 = vmatprep.mubr.msk.bf16.mxu0 %vm216_vm0, %v215_v0  ;;  %v43_v3 = vpack.c.bf16 %v42_v2, %v42_v2  ;;  %vm59_vm1 = vcmask 130048   ;;  %v120_v4 = vld [vmem:[%s286_s2] ss:$0 sm:$0xff]  ;;  %s217_s12 = smov [#allocation7]  }
  0x28   :  { %126 = vmatpush3.bf16.msra.mxu0 %v138_v1  ;;  %s110_s1 = sshll.u32 %s217_s12, 4  ;;  %s111_s1 = int_to_ptr.vmem [resolvable:$true] %s110_s1 }
  0x29   :  { %s183_s13 = scalar_lea.vmem %s111_s1, 128  ;;  %p188_p3 = scmp.lt.s32.totalorder %s111_s1, %s111_s1 }
  0x2a   :  { %p184_p2 = scmp.ne.s32.totalorder %s111_s1, %s183_s13  ;;  %p189_p4 = scmp.lt.s32.totalorder %s183_s13, %s183_s13 }
  0x2b   :  { %128 = vmatmul.mubr.msk.bf16.vlgmr.msra.gmra.mrb[0].mxu0 %vm59_vm1, %v43_v3 }
  0x2c   :  { %p190_p5 = por %p189_p4, %p188_p3 }
  0x2e   :  { %p191_p6 = pnand %p190_p5, %p184_p2 }
  0xfe   :  { %v97_v5 = vpop.f32.mrb[0].mxu0 }
  0xff   :  { %v98_v6 = vadd.f32 %v120_v4, %v97_v5  ;;  %v129_v7 = vpop.f32.mrb[1].mxu0 }
 0x100   :  { %v100_v8 = vpop.f32.mrb[2].mxu0 }
 0x101   :  { %103 = vst.msk [vmem:[#allocation7] sm:$0xff] %vm59_vm1, %v98_v6  ;;  %v130_v9 = vpop.f32.mrb[3].mxu0 }
 0x102   :  { %194 = shalt.err (!%p191_p6)
}
 0x103   :  { %s195_s2 = scalar_lea.hbm %s287_s3, 128 }
 0x104   :  { %p196_p7 = scmp.ne.s32.totalorder %s287_s3, %s195_s2  ;;  %p199_p8 = scmp.lt.u32.totalorder %s195_s2, %s287_s3 }
 0x106   :  { %p201_p9 = pnand %p199_p8, %p196_p7 }
 0x108   :  { %204 = shalt.err (!%p201_p9)
}
 0x109   :  { %113 = dma.vmem_to_hbm [thread:$0]  %s111_s1, 128, %s287_s3, [#allocation4]  }
 0x10a   :  { %209 = dma.done.wait [#allocation4], 128  }
 0x10b   :  { %210 = vsyncadd [#allocation4], 4294967168 }
 0x10c   :  { %117 = vsyncpa [#allocation3], 1 }
 0x10d   :  { %118 = vsyncpa [#allocation6], 1 }
 0x10e   :  { %119 = vsyncpa [#allocation4], 1 }

</bundles_post_ra>
